<compile_context>
chip_gen: v5e
topology: v5e:2x2
jax: 0.10.0
libtpu: 0.0.40
codegen_flags: <defaults>
</compile_context>

<pallas_src>
import functools

import jax
import jax.numpy as jnp
from jax.experimental import pallas as pl
from jax.experimental.pallas import tpu as pltpu

_LANES = 128
_MIB = 1024 * 1024


def _ln_kernel(x_ref, g_ref, b_ref, o_ref, *, eps, n_valid):
    # x_ref: (TN, S, 128) or (TN, F).  g_ref/b_ref: (1, S, 128) or (1, F),
    # broadcast against the sample rows.
    x = x_ref[...].astype(jnp.float32)
    red = tuple(range(1, x.ndim))

    # Pass 1: mean.  Pass 2: unbiased variance from deviations (reused below).
    mean = jnp.sum(x, axis=red, keepdims=True) * (1.0 / jnp.float32(n_valid))
    d = x - mean
    var = jnp.sum(d * d, axis=red, keepdims=True) * (
        1.0 / jnp.float32(max(n_valid - 1, 1))
    )
    inv = 1.0 / (jnp.sqrt(var) + eps)          # torch: (x - mean) / (std + eps)

    # y = (x - mean) * inv * gamma + beta  — deviations already in VMEM.
    y = (d * inv) * g_ref[...] + b_ref[...]
    o_ref[...] = y.astype(o_ref.dtype)


def _pick_tn(n, per_sample_bytes, *, target_bytes=2 * _MIB, min_steps=4, multiple=1):
    """Samples per grid step: aim for ~target_bytes per x block, keep >=
    min_steps grid steps when N allows, honor a sublane-multiple constraint."""
    tn = max(1, target_bytes // max(per_sample_bytes, 1))
    if n > 1:
        tn = min(tn, max(1, n // min(min_steps, n)))
    tn = int(max(1, min(tn, n)))
    if multiple > 1 and tn != n:
        # 2-D blocks: second-to-last dim must be a multiple of 8 or the full dim.
        tn = min(n, max(multiple, (tn // multiple) * multiple))
    return tn


def layer_norm(x, gamma, beta, eps=1e-8):
    """x: (N, C, ...). Per-sample moments over all non-batch dims, then
    per-channel affine.  (The module's N==1 special case is numerically the
    same as the per-row path.)"""
    N = x.shape[0]
    C = x.shape[1]
    F = 1
    for d in x.shape[1:]:
        F *= d
    per_ch = F // C
    itemsize = jnp.dtype(x.dtype).itemsize

    # Per-channel params expanded once to the flat per-feature layout (read a
    # single time by the kernel thanks to the constant index_map).
    gf = jnp.repeat(gamma.astype(jnp.float32), per_ch)     # (F,)
    bf = jnp.repeat(beta.astype(jnp.float32), per_ch)      # (F,)

    if F % _LANES == 0:
        # Lane-dense (S, 128) view per sample: full (8,128) tiles even when TN
        # is small.  No padding needed.
        S = F // _LANES
        x_in = x.reshape(N, S, _LANES)
        g_in = gf.reshape(1, S, _LANES)
        b_in = bf.reshape(1, S, _LANES)
        per_sample_bytes = S * _LANES * itemsize
        tn = _pick_tn(N, per_sample_bytes)
        in_specs = [
            pl.BlockSpec((tn, S, _LANES), lambda i: (i, 0, 0)),
            pl.BlockSpec((1, S, _LANES), lambda i: (0, 0, 0)),
            pl.BlockSpec((1, S, _LANES), lambda i: (0, 0, 0)),
        ]
        out_spec = pl.BlockSpec((tn, S, _LANES), lambda i: (i, 0, 0))
        out_shape = jax.ShapeDtypeStruct((N, S, _LANES), x.dtype)
        param_elems = S * _LANES
    else:
        # F not a multiple of 128: full-extent feature dim (allowed for any F),
        # so no host-side pad of x and no output slice — Mosaic masks its own
        # internal tile padding in the reductions and stores.
        x_in = x.reshape(N, F)
        g_in = gf.reshape(1, F)
        b_in = bf.reshape(1, F)
        per_sample_bytes = F * itemsize
        tn = _pick_tn(N, per_sample_bytes, multiple=8)
        in_specs = [
            pl.BlockSpec((tn, F), lambda i: (i, 0)),
            pl.BlockSpec((1, F), lambda i: (0, 0)),
            pl.BlockSpec((1, F), lambda i: (0, 0)),
        ]
        out_spec = pl.BlockSpec((tn, F), lambda i: (i, 0))
        out_shape = jax.ShapeDtypeStruct((N, F), x.dtype)
        param_elems = F

    grid = (pl.cdiv(N, tn),)

    # VMEM budget: double-buffered x + out blocks, params (counted x2 to be
    # safe), plus f32 temporaries (x upcast, deviations, y) — then capped at
    # 75% of the per-core VMEM (≈48 MiB on v7x, ≈96 MiB on v5e/v6e).
    blk_x = tn * per_sample_bytes
    blk_p = param_elems * 4
    f32_tmp = 3 * tn * param_elems * 4
    need = 2 * (blk_x + blk_x) + 4 * blk_p + f32_tmp
    try:
        vmem_cap = int(pltpu.get_tpu_info().vmem_capacity_bytes)
    except Exception:
        vmem_cap = 64 * _MIB                    # v7x per-core size: safe floor
    vmem_limit = min(int(0.75 * vmem_cap), max(32 * _MIB, need + 16 * _MIB))

    out = pl.pallas_call(
        functools.partial(_ln_kernel, eps=float(eps), n_valid=F),
        out_shape=out_shape,
        grid=grid,
        in_specs=in_specs,
        out_specs=out_spec,
        compiler_params=pltpu.CompilerParams(
            dimension_semantics=("parallel",),
            vmem_limit_bytes=int(vmem_limit),
        ),
    )(x_in, g_in, b_in)

    return out.reshape(x.shape)


def layer_norm_ref(x, gamma, beta, eps=1e-8):
    # Pure-JAX reference mirroring the PyTorch forward (N==1 and N>1 branches
    # coincide numerically: both reduce over all non-batch elements).
    N = x.shape[0]
    flat = x.reshape(N, -1).astype(jnp.float32)
    mean = flat.mean(axis=1)
    var = jnp.sum((flat - mean[:, None]) ** 2, axis=1) / (flat.shape[1] - 1)
    std = jnp.sqrt(var)
    shape = (-1,) + (1,) * (x.ndim - 1)
    y = (x.astype(jnp.float32) - mean.reshape(shape)) / (std.reshape(shape) + eps)
    aff_shape = (1, -1) + (1,) * (x.ndim - 2)
    y = y * gamma.reshape(aff_shape) + beta.reshape(aff_shape)
    return y.astype(x.dtype)


if __name__ == "__main__":
    key = jax.random.PRNGKey(0)
    kx, kg = jax.random.split(key)

    N, C, H, W = 2, 4, 16, 16
    x = jax.random.normal(kx, (N, C, H, W), dtype=jnp.float32)
    # gamma ~ U[0,1) (torch .uniform_()), beta = zeros — deterministic init.
    gamma = jax.random.uniform(kg, (C,), dtype=jnp.float32)
    beta = jnp.zeros((C,), dtype=jnp.float32)

    out = layer_norm(x, gamma, beta, eps=1e-8)
    out = jax.block_until_ready(out)

    ref = layer_norm_ref(x, gamma, beta, eps=1e-8)
    assert out.shape == (N, C, H, W)
    assert jnp.allclose(out, ref, atol=1e-5, rtol=1e-5), "mismatch vs reference"

    # Also exercise a non-divisible batch and a non-128-multiple feature count
    # (the masked / full-extent-feature path) at small scale.
    N2, C2, H2, W2 = 3, 3, 5, 7                       # F = 105, not % 128
    x2 = jax.random.normal(kx, (N2, C2, H2, W2), dtype=jnp.float32)
    g2 = jax.random.uniform(kg, (C2,), dtype=jnp.float32)
    b2 = jnp.zeros((C2,), dtype=jnp.float32)
    out2 = jax.block_until_ready(layer_norm(x2, g2, b2, eps=1e-8))
    ref2 = layer_norm_ref(x2, g2, b2, eps=1e-8)
    assert jnp.allclose(out2, ref2, atol=1e-5, rtol=1e-5), "mismatch (unaligned F)"

    print("KERNEL_OK")
</pallas_src>

<mosaic_0001>
module attributes {stable_mosaic.version = 11 : i64} {
  func.func @_ln_kernel(%arg0: i32, %arg1: memref<1x8x128xf32, #tpu.memory_space<vmem>>, %arg2: memref<1x8x128xf32, #tpu.memory_space<vmem>>, %arg3: memref<1x8x128xf32, #tpu.memory_space<vmem>>, %arg4: memref<1x8x128xf32, #tpu.memory_space<vmem>>) attributes {dimension_semantics = [#tpu.dimension_semantics<parallel>], iteration_bounds = array<i64: 2>, scalar_prefetch = 0 : i64, scratch_operands = 0 : i64, tpu.core_type = #tpu.core_type<tc>, window_params = [{transform_indices = @transform_0, window_bounds = array<i64: 1, 8, 128>}, {pipeline_mode = #tpu.pipeline_mode<synchronous>, transform_indices = @transform_1, window_bounds = array<i64: 1, 8, 128>}, {pipeline_mode = #tpu.pipeline_mode<synchronous>, transform_indices = @transform_2, window_bounds = array<i64: 1, 8, 128>}, {transform_indices = @transform_3, window_bounds = array<i64: 1, 8, 128>}]} {
    %c0 = arith.constant 0 : index
    %c0_0 = arith.constant 0 : index
    %c0_1 = arith.constant 0 : index
    %0 = vector.load %arg1[%c0, %c0_0, %c0_1] : memref<1x8x128xf32, #tpu.memory_space<vmem>>, vector<1x8x128xf32>
    %cst = arith.constant dense<0.000000e+00> : vector<1xf32>
    %1 = vector.multi_reduction <add>, %0, %cst [1, 2] : vector<1x8x128xf32> to vector<1xf32>
    %2 = vector.shape_cast %1 : vector<1xf32> to vector<1x1x1xf32>
    %cst_2 = arith.constant 1.000000e+00 : f32
    %cst_3 = arith.constant 1.024000e+03 : f32
    %3 = arith.divf %cst_2, %cst_3 : f32
    %4 = vector.broadcast %3 : f32 to vector<1x1x1xf32>
    %5 = arith.mulf %2, %4 : vector<1x1x1xf32>
    %6 = vector.broadcast %5 : vector<1x1x1xf32> to vector<1x8x128xf32>
    %7 = arith.subf %0, %6 : vector<1x8x128xf32>
    %8 = arith.mulf %7, %7 : vector<1x8x128xf32>
    %cst_4 = arith.constant dense<0.000000e+00> : vector<1xf32>
    %9 = vector.multi_reduction <add>, %8, %cst_4 [1, 2] : vector<1x8x128xf32> to vector<1xf32>
    %10 = vector.shape_cast %9 : vector<1xf32> to vector<1x1x1xf32>
    %cst_5 = arith.constant 1.000000e+00 : f32
    %cst_6 = arith.constant 1.023000e+03 : f32
    %11 = arith.divf %cst_5, %cst_6 : f32
    %12 = vector.broadcast %11 : f32 to vector<1x1x1xf32>
    %13 = arith.mulf %10, %12 : vector<1x1x1xf32>
    %14 = math.sqrt %13 : vector<1x1x1xf32>
    %cst_7 = arith.constant 9.99999993E-9 : f32
    %15 = vector.broadcast %cst_7 : f32 to vector<1x1x1xf32>
    %16 = arith.addf %14, %15 : vector<1x1x1xf32>
    %cst_8 = arith.constant 1.000000e+00 : f32
    %17 = vector.broadcast %cst_8 : f32 to vector<1x1x1xf32>
    %18 = arith.divf %17, %16 : vector<1x1x1xf32>
    %19 = vector.broadcast %18 : vector<1x1x1xf32> to vector<1x8x128xf32>
    %20 = arith.mulf %7, %19 : vector<1x8x128xf32>
    %c0_9 = arith.constant 0 : index
    %c0_10 = arith.constant 0 : index
    %c0_11 = arith.constant 0 : index
    %21 = vector.load %arg2[%c0_9, %c0_10, %c0_11] : memref<1x8x128xf32, #tpu.memory_space<vmem>>, vector<1x8x128xf32>
    %22 = arith.mulf %20, %21 : vector<1x8x128xf32>
    %c0_12 = arith.constant 0 : index
    %c0_13 = arith.constant 0 : index
    %c0_14 = arith.constant 0 : index
    %23 = vector.load %arg3[%c0_12, %c0_13, %c0_14] : memref<1x8x128xf32, #tpu.memory_space<vmem>>, vector<1x8x128xf32>
    %24 = arith.addf %22, %23 : vector<1x8x128xf32>
    %c0_15 = arith.constant 0 : index
    %c0_16 = arith.constant 0 : index
    %c0_17 = arith.constant 0 : index
    %25 = vector.load %arg4[%c0_15, %c0_16, %c0_17] : memref<1x8x128xf32, #tpu.memory_space<vmem>>, vector<1x8x128xf32>
    tpu.vector_store %arg4[%c0_15, %c0_16, %c0_17], %24 {strides = array<i32>} : memref<1x8x128xf32, #tpu.memory_space<vmem>>, vector<1x8x128xf32>,
    return
  }
  func.func @transform_0(%arg0: i32) -> (i32, i32, i32) {
    %c0_i32 = arith.constant 0 : i32
    %c0_i32_0 = arith.constant 0 : i32
    %c0_i32_1 = arith.constant 0 : i32
    return %arg0, %c0_i32, %c0_i32_0 : i32, i32, i32
  }
  func.func @transform_1(%arg0: i32) -> (i32, i32, i32) {
    %c0_i32 = arith.constant 0 : i32
    %c0_i32_0 = arith.constant 0 : i32
    %c0_i32_1 = arith.constant 0 : i32
    %c0_i32_2 = arith.constant 0 : i32
    return %c0_i32, %c0_i32_0, %c0_i32_1 : i32, i32, i32
  }
  func.func @transform_2(%arg0: i32) -> (i32, i32, i32) {
    %c0_i32 = arith.constant 0 : i32
    %c0_i32_0 = arith.constant 0 : i32
    %c0_i32_1 = arith.constant 0 : i32
    %c0_i32_2 = arith.constant 0 : i32
    return %c0_i32, %c0_i32_0, %c0_i32_1 : i32, i32, i32
  }
  func.func @transform_3(%arg0: i32) -> (i32, i32, i32) {
    %c0_i32 = arith.constant 0 : i32
    %c0_i32_0 = arith.constant 0 : i32
    %c0_i32_1 = arith.constant 0 : i32
    return %arg0, %c0_i32, %c0_i32_0 : i32, i32, i32
  }
}

</mosaic_0001>

<bundles_post_ra>
// kernel: tpu_custom_call.1
= control target key start
LH: loop header
LB: loop body
LE: loop exit
PB: predicated region body
PF: predicated region fallthrough
CT: control target
= control target key end

     0   :  { %8 = vsyncpa [#allocation3], 0  ;;  %s793_s0 = inlined_call_operand.hbm [shape: f32[2,8,128], index: 0, kind: input, shape index: {}]   ;;  %s794_s1 = inlined_call_operand.hbm [shape: f32[1,8,128], index: 1, kind: input, shape index: {}]   ;;  %s795_s2 = inlined_call_operand.hbm [shape: f32[1,8,128], index: 2, kind: input, shape index: {}]   ;;  %s796_s3 = inlined_call_operand.hbm [shape: f32[2,8,128], index: 3, kind: output, shape index: {}]  }
   0x1   :  { %10 = vsyncpa [#allocation3 + $0x1], 0 }
   0x2   :  { %11 = vsyncpa [#allocation6], 0 }
   0x3   :  { %12 = vsyncpa [#allocation4], 0 }
   0x4   :  { %14 = vsyncpa [#allocation4 + $0x1], 0  ;;  %s648_s12 = smov 0   ;;  %s650_s13 = smov 0  }
   0x5   :  { %s652_s14 = smov 0   ;;  %s654_s15 = smov 0  }
   0x6 LB: > { %s669_s16 = sadd.s32 4294967295, %s624_s15   ;;  %s377_s17 = sadd.s32 4294967294, %s624_s15   ;;  %s624_s15 = sphi %s654_s15, %s806_s15   ;;  %s620_s14 = sphi %s652_s14, %s805_s14   ;;  %s616_s13 = sphi %s650_s13, %s804_s13   ;;  %s612_s12 = sphi %s648_s12, %s803_s12  }
   0x7   : > { %p40_p0 = scmp.ne.s32.totalorder %s616_s13, %s612_s12  ;;  %p41_p1 = scmp.eq.s32.totalorder %s669_s16, 0 }
   0x8   : > { %p106_p2 = scmp.eq.s32.totalorder %s669_s16, 1  ;;  %p112_p3 = scmp.eq.s32.totalorder %s377_s17, 1 }
   0x9   : > { %p678_p4 = por %p41_p1, %p40_p0  ;;  %p378_p5 = scmp.ge.s32.totalorder %s624_s15, 1 }
   0xa   : > { %p683_p6 = por %p112_p3, %p40_p0  ;;  %p119_p7 = scmp.lt.s32.totalorder %s624_s15, 3 }
   0xb   : > { %s131_s22 = sshll.u32 %s794_s1, 4  ;;  %s626_s24 = smov [#allocation5]   ;;  %s132_s22 = int_to_ptr.hbm [resolvable:$true] %s131_s22 }
   0xc   : > { %p691_p8 = pnand %p378_p5, %p119_p7  ;;  %s133_s25 = sshll.u32 %s626_s24, 4  ;;  %s134_s25 = int_to_ptr.vmem [resolvable:$true] %s133_s25 }
   0xd   : > { %s143_s28 = sshll.u32 %s795_s2, 4  ;;  %s627_s29 = smov [#allocation7]   ;;  %s144_s28 = int_to_ptr.hbm [resolvable:$true] %s143_s28 }
   0xe   : > { %p405_p10 = pneg %p691_p8  ;;  %s145_s30 = sshll.u32 %s627_s29, 4  ;;  %s146_s30 = int_to_ptr.vmem [resolvable:$true] %s145_s30 }
   0xf   : > { %s704_s4 = sadd.s32 1, %s624_s15   ;;  %s27_s5 = sadd.s32 1, %s620_s14 }
  0x10   : > { %p406_p11 = pnand %p405_p10, %p41_p1  ;;  %s24_s6 = ssub.s32 %s624_s15, %s704_s4 }
  0x11   : > { %p34_p12 = scmp.ne.s32.totalorder %s620_s14, %s616_s13  ;;  %p25_p13 = scmp.eq.s32.totalorder %s24_s6, 0 }
  0x12   : > { %408 = dma.hbm_to_vmem [thread:$0]  (!%p406_p11), %s132_s22, 128, %s134_s25, [#allocation6]  }
  0x13   : > { %411 = dma.hbm_to_vmem [thread:$0]  (!%p406_p11), %s144_s28, 128, %s146_s30, [#allocation6]  }
  0x14   : > { %p35_p0 = scmp.eq.s32.totalorder %s624_s15, 0  ;;  %p714_p3 = por %p106_p2, %p34_p12 }
  0x15   : > { %p422_p5 = scmp.lt.s32.totalorder %s624_s15, 2  ;;  %s156_s9 = sand.u32 1, %s620_s14  }
  0x16   : > { %s720_s8 = scalar_select %p25_p13, %s620_s14, %s27_s5  }
  0x17   : > { %p36_p7 = por %p35_p0, %p34_p12  ;;  %s382_s10 = sshll.u32 %s156_s9, 3 }
  0x18   : > { %s383_s11 = sshll.u32 %s624_s15, 3  ;;  %s160_s22 = scalar_lea.vmem [#allocation2], %s382_s10 }
  0x19   : > { %s164_s21 = scalar_lea.hbm %s793_s0, %s383_s11  ;;  %s168_s24 = sshll.u32 %s160_s22, 4  ;;  %s169_s24 = int_to_ptr.vmem [resolvable:$true] %s168_s24 }
  0x1a   : > { %s166_s25 = sshll.u32 %s164_s21, 4  ;;  %p727_p2 = pnand %p422_p5, %p36_p7  ;;  %s167_s25 = int_to_ptr.hbm [resolvable:$true] %s166_s25 }
  0x1b   : > { %s157_s27 = scalar_lea.sflag [#allocation3], %s156_s9  ;;  %s524_s28 = sshra.s32 %s167_s25, 4  ;;  %s525_s28 = int_to_ptr.hbm [resolvable:$true] %s524_s28 }
  0x1c   : > { %s526_s29 = scalar_lea.hbm %s525_s28, 8  ;;  %p528_p11 = pneg %p727_p2 }
  0x1d   : > { %p527_p10 = scmp.ne.s32.totalorder %s525_s28, %s526_s29  ;;  %s531_s6 = scalar_lea.hbm %s793_s0, 16 }
  0x1e   : > { %p532_p0 = scmp.lt.s32.totalorder %s525_s28, %s793_s0  ;;  %p533_p5 = scmp.lt.s32.totalorder %s531_s6, %s526_s29 }
  0x1f   : > { %p529_p12 = pnand %p528_p11, %p527_p10 }
  0x20   : > { %p534_p7 = por %p533_p5, %p532_p0 }
  0x21   : > { %p530_p13 = pneg %p529_p12 }
  0x23   : > { %p535_p9 = pnand %p534_p7, %p530_p13 }
  0x25   : > { %538 = shalt.err (!%p535_p9)
}
  0x26   : > { %415 = dma.hbm_to_vmem [thread:$0]  (!%p727_p2), %s167_s25, 128, %s169_s24, %s157_s27  }
  0x27   : > { %177 = sbr.rel (%p691_p8) target bundleno = 361 (0x169), region = 32  ;;  %s744_s9 = sand.u32 (!%p691_p8), 1, %s616_s13  }
  0x28   : > { %s385_s17 = sshll.u32 (!%p691_p8), %s744_s9, 3  ;;  %s180_s20 = scalar_lea.sflag (!%p691_p8), [#allocation3], %s744_s9 }
  0x29   : > { %s183_s21 = scalar_lea.vmem (!%p691_p8), [#allocation2], %s385_s17 }
  0x2c   : > { %599 = dma.done.wait (%p678_p4), %s180_s20, 128  }
  0x2d   : > { %601 = vsyncadd (%p678_p4), %s180_s20, 4294967168 }
  0x2e   : > { %603 = dma.done.wait (%p41_p1), [#allocation6], 256  }
  0x2f   : > { %605 = vsyncadd (%p41_p1), [#allocation6], 4294967040  ;;  %v217_v0 = vld [vmem:[%s183_s21] sm:$0xff]  ;;  %s390_s18 = sshll.u32 %s669_s16, 3  ;;  %v267_v40 = vld [vmem:[#allocation5] sm:$0xff]  ;;  %s216_s25 = scalar_lea.vmem [#allocation8], %s385_s17 }
  0x30   : > { %218 = vadd.xlane.f32.xlu0 %v217_v0  ;;  %s283_s24 = scalar_lea.hbm %s796_s3, %s390_s18  ;;  %v269_v42 = vld [vmem:[#allocation7] sm:$0xff]  ;;  %s285_s26 = sshll.u32 %s216_s25, 4  ;;  %s286_s26 = int_to_ptr.vmem [resolvable:$true] %s285_s26 }
  0x31   : > { %s287_s16 = sshll.u32 %s283_s24, 4  ;;  %s273_s27 = scalar_lea.sflag [#allocation4], %s744_s9  ;;  %s288_s16 = int_to_ptr.hbm [resolvable:$true] %s287_s16 }
  0x32   : > { %s568_s28 = sshra.s32 %s288_s16, 4  ;;  %s574_s6 = scalar_lea.hbm %s796_s3, 16  ;;  %s569_s28 = int_to_ptr.hbm [resolvable:$true] %s568_s28 }
  0x33   : > { %s570_s29 = scalar_lea.hbm %s569_s28, 8  ;;  %p575_p9 = scmp.lt.s32.totalorder %s569_s28, %s796_s3 }
  0x34   : > { %p571_p1 = scmp.ne.s32.totalorder %s569_s28, %s570_s29  ;;  %p576_p2 = scmp.lt.s32.totalorder %s574_s6, %s570_s29 }
  0x36   : > { %p572_p4 = pnand %p571_p1, %p714_p3  ;;  %p577_p10 = por %p576_p2, %p575_p9 }
  0x38   : > { %p573_p8 = pneg %p572_p4 }
  0x3a   : > { %p578_p11 = pnand %p577_p10, %p573_p8 }
  0xa3   : > { %v219_v1 = vpop.xlane.xlu0 %218 }
  0xa4   : > { %v220_v2 = vrot.slane %v219_v1, 4 }
  0xa6   : > { %v221_v3 = vadd.f32 %v220_v2, %v219_v1 }
  0xa8   : > { %v222_v4 = vrot.slane %v221_v3, 2 }
  0xaa   : > { %v223_v5 = vadd.f32 %v222_v4, %v221_v3 }
  0xac   : > { %v224_v6 = vrot.slane %v223_v5, 1 }
  0xae   : > { %v225_v7 = vadd.f32 %v224_v6, %v223_v5 }
  0xb0   : > { %v226_v8 = vmul.f32 0.0009765625, %v225_v7 }
  0xb2   : > { %v227_v9 = vsub.f32 %v217_v0, %v226_v8 }
  0xb4   : > { %v228_v10 = vmul.f32 %v227_v9, %v227_v9 }
  0xb6   : > { %229 = vadd.xlane.f32.xlu0 %v228_v10 }
 0x129   : > { %v230_v11 = vpop.xlane.xlu0 %229 }
 0x12a   : > { %v231_v12 = vrot.slane %v230_v11, 4 }
 0x12c   : > { %v232_v13 = vadd.f32 %v231_v12, %v230_v11 }
 0x12e   : > { %v233_v14 = vrot.slane %v232_v13, 2 }
 0x130   : > { %v234_v15 = vadd.f32 %v233_v14, %v232_v13 }
 0x132   : > { %v235_v16 = vrot.slane %v234_v15, 1 }
 0x134   : > { %v236_v17 = vadd.f32 %v235_v16, %v234_v15 }
 0x136   : > { %v237_v18 = vmul.f32 0.0009775171, %v236_v17 }
 0x138   : > { %460 = vrsqrt.f32 %v237_v18  ;;  %vm245_vm0 = vcmp.eq.f32.partialorder %v237_v18, inf  ;;  %v248_v26 = vand.u32 2147483648, %v237_v18  ;;  %vm247_vm1 = vcmp.eq.f32.partialorder %v237_v18, 0.0 }
 0x13e   : > { %v461_v19 = vpop.eup %460 }
 0x13f   : > { %v239_v20 = vmul.f32 %v461_v19, %v237_v18 }
 0x141   : > { %v240_v21 = vmul.f32 %v461_v19, %v239_v20 }
 0x143   : > { %v241_v22 = vmul.f32 0.5, %v240_v21 }
 0x145   : > { %v242_v23 = vsub.f32 1.5, %v241_v22 }
 0x147   : > { %v243_v24 = vmul.f32 %v461_v19, %v242_v23 }
 0x149   : > { %v244_v25 = vmul.f32 %v243_v24, %v237_v18 }
 0x14b   : > { %v246_v27 = vsel %vm245_vm0, %v237_v18, %v244_v25 }
 0x14c   : > { %v249_v28 = vsel %vm247_vm1, %v248_v26, %v246_v27 }
 0x14d   : > { %v250_v29 = vadd.f32 1e-08, %v249_v28 }
 0x14f   : > { %462 = vrcp.f32 %v250_v29  ;;  %v262_v33 = vand.u32 2147483648, %v250_v29  ;;  %v260_v35 = vand.u32 2147483647, %v250_v29  ;;  %vm256_vm3 = vweird.f32 %v250_v29 }
 0x151   : > { %v263_v37 = vor.u32 1.1754944e-38, %v262_v33  ;;  %vm261_vm5 = vcmp.eq.f32.partialorder %v260_v35, 8.507059e+37 }
 0x155   : > { %v463_v30 = vpop.eup %462 }
 0x156   : > { %v252_v31 = vmul.f32 %v463_v30, %v250_v29  ;;  %vm257_vm2 = vweird.f32 %v463_v30 }
 0x157   : > { %vm258_vm4 = vmor %vm256_vm3, %vm257_vm2 }
 0x158   : > { %v253_v32 = vsub.f32 1.0, %v252_v31 }
 0x15a   : > { %v254_v34 = vmul.f32 %v463_v30, %v253_v32 }
 0x15c   : > { %v255_v36 = vadd.f32 %v463_v30, %v254_v34 }
 0x15e   : > { %v259_v38 = vsel %vm258_vm4, %v463_v30, %v255_v36 }
 0x15f   : > { %v264_v39 = vsel %vm261_vm5, %v263_v37, %v259_v38 }
 0x160   : > { %v266_v41 = vmul.f32 %v264_v39, %v227_v9 }
 0x162   : > { %v268_v43 = vmul.f32 %v267_v40, %v266_v41 }
 0x164   : > { %v270_v44 = vadd.f32 %v269_v42, %v268_v43 }
 0x166   : > { %271 = vst [vmem:[%s216_s25] sm:$0xff] %v270_v44 }
 0x167   : > { %581 = shalt.err (!%p578_p11)
}
 0x168   : > { %403 = dma.vmem_to_hbm [thread:$0]  (%p714_p3), %s286_s26, 128, %s288_s16, %s273_s27  }
 0x169 PF: > { %s299_s9 = sand.u32 1, %s612_s12   ;;  %p802_p12 = scmp.ge.s32.totalorder %s624_s15, 2 }
 0x16a   : > { %s300_s17 = scalar_lea.sflag [#allocation4], %s299_s9 }
 0x16b   : > { %p417_p13 = pnand %p802_p12, %p683_p6 }
 0x16d   : > { %p418_p0 = pneg %p417_p13 }
 0x16f   : > { %607 = dma.done.wait (%p418_p0), %s300_s17, 128  }
 0x170   : > { %609 = vsyncadd (%p418_p0), %s300_s17, 4294967168  ;;  %p17_p5 = scmp.ge.s32.totalorder %s704_s4, 4   ;;  %s803_s12 = smov %s616_s13 }
 0x171   : > { %s804_s13 = smov %s620_s14  ;;  %s805_s14 = smov %s720_s8 }
 0x172   : > { %s806_s15 = smov %s704_s4  ;;  %19 = sbr.rel (!%p17_p5) target bundleno = 6 (0x6), region = 85 }
 0x177   :  { %306 = vsyncpa [#allocation3], 1 }
 0x178   :  { %308 = vsyncpa [#allocation3 + $0x1], 1 }
 0x179   :  { %309 = vsyncpa [#allocation6], 1 }
 0x17a   :  { %310 = vsyncpa [#allocation4], 1 }
 0x17b   :  { %312 = vsyncpa [#allocation4 + $0x1], 1 }

</bundles_post_ra>
